<compile_context>
chip_gen: v7x
topology: tpu7x:2x2x1
jax: 0.10.0
libtpu: 0.0.40
codegen_flags: <defaults>
</compile_context>

<pallas_src>
import functools
import math

import jax
import jax.numpy as jnp
from jax.experimental import pallas as pl
from jax.experimental.pallas import tpu as pltpu  # noqa: F401 (TPU memory spaces etc.)

LANE = 128


# ----------------------------------------------------------------------------
# Fused kernel: SCL logits + CE@0  and  ClassificationHead + CE(label)
# ----------------------------------------------------------------------------
def _fused_kernel(inv_temperature, esp, num_classes,
                  q_ref, lab_col_ref, lab_row_ref, cls_lab_ref,
                  w1_ref, b1_ref, w2_ref, b2_ref, w3_ref, b3_ref,
                  out_ref, loss_ref):
    q = q_ref[...]                                           # (B, D) f32

    # ---------------- SCL branch ----------------
    # F.normalize(q, dim=-1); k = stop_gradient(q) -> k_norm == q_norm.
    q_norm = q * jax.lax.rsqrt(
        jnp.maximum(jnp.sum(q * q, axis=-1, keepdims=True), 1e-24))
    qn_bf = q_norm.astype(jnp.bfloat16)

    # (B, B) cosine-sim / temperature, contracting dim 1 of both (no .T).
    logits = jax.lax.dot_general(
        qn_bf, qn_bf,
        dimension_numbers=(((1,), (1,)), ((), ())),
        preferred_element_type=jnp.float32) * inv_temperature

    same = (lab_col_ref[...] == lab_row_ref[...]).astype(jnp.float32)  # (B, B)
    pos = jnp.sum(logits * same, axis=1, keepdims=True) / jnp.maximum(
        jnp.sum(same, axis=1, keepdims=True), esp)                     # (B, 1)
    neg = logits * (1.0 - same)                                        # (B, B)

    # cross entropy with target class 0 over concat([pos, neg]) — computed
    # directly without materializing the unaligned (B, B+1) tensor.
    m = jnp.maximum(pos, jnp.max(neg, axis=1, keepdims=True))
    lse = jnp.log(jnp.exp(pos - m)
                  + jnp.sum(jnp.exp(neg - m), axis=1, keepdims=True)) + m
    loss_label_mean = jnp.mean(lse - pos)                              # scalar

    # ---------------- classifier branch ----------------
    h1 = jnp.tanh(jnp.dot(q.astype(jnp.bfloat16), w1_ref[...],
                          preferred_element_type=jnp.float32) + b1_ref[...])
    h2 = jnp.tanh(jnp.dot(h1.astype(jnp.bfloat16), w2_ref[...],
                          preferred_element_type=jnp.float32) + b2_ref[...])
    out = jnp.dot(h2.astype(jnp.bfloat16), w3_ref[...],
                  preferred_element_type=jnp.float32) + b3_ref[...]    # (B, Cp)
    out_ref[...] = out

    # cross entropy vs integer label; mask padded lanes (col >= num_classes).
    col = jax.lax.broadcasted_iota(jnp.int32, out.shape, 1)
    out_m = jnp.where(col < num_classes, out, -1e30)
    mo = jnp.max(out_m, axis=1, keepdims=True)
    lse_c = jnp.log(jnp.sum(jnp.exp(out_m - mo), axis=1, keepdims=True)) + mo
    onehot = (col == cls_lab_ref[...]).astype(jnp.float32)
    picked = jnp.sum(out * onehot, axis=1, keepdims=True)
    loss_cls_mean = jnp.mean(lse_c - picked)                           # scalar

    # single lane-dense (1, 128) loss vector: lane0 = SCL loss, lane1 = CLS loss
    lane = jax.lax.broadcasted_iota(jnp.int32, (1, LANE), 1)
    loss_ref[...] = (loss_label_mean * (lane == 0).astype(jnp.float32)
                     + loss_cls_mean * (lane == 1).astype(jnp.float32))


# ----------------------------------------------------------------------------
# Parameter init (matches ClassificationHead.__init__ distributions), padded
# to 128-lane widths; weights stored bf16 (MXU inputs), biases f32.
# ----------------------------------------------------------------------------
def init_classifier_params(key, in_dim, out_dim):
    d4, d16 = in_dim // 4, in_dim // 16
    ks = jax.random.split(key, 6)

    def xavier(k, fan_in, fan_out):
        bound = math.sqrt(6.0 / (fan_in + fan_out))
        return jax.random.uniform(k, (fan_in, fan_out), jnp.float32,
                                  -bound, bound)

    def rup(n):
        return max(LANE, ((n + LANE - 1) // LANE) * LANE)

    p1, p2, pc = rup(d4), rup(d16), rup(out_dim)

    W1 = xavier(ks[0], in_dim, d4)
    b1 = (1e-6 * jax.random.normal(ks[1], (1, d4))).astype(jnp.float32)
    W2 = xavier(ks[2], d4, d16)
    b2 = (1e-6 * jax.random.normal(ks[3], (1, d16))).astype(jnp.float32)
    W3 = xavier(ks[4], d16, out_dim)
    b3 = (1e-6 * jax.random.normal(ks[5], (1, out_dim))).astype(jnp.float32)

    def pad(a, rows, cols):
        z = jnp.zeros((rows, cols), jnp.float32)
        return z.at[:a.shape[0], :a.shape[1]].set(a)

    return {
        "W1p": pad(W1, in_dim, p1).astype(jnp.bfloat16),
        "b1p": pad(b1, 1, p1),
        "W2p": pad(W2, p1, p2).astype(jnp.bfloat16),
        "b2p": pad(b2, 1, p2),
        "W3p": pad(W3, p2, pc).astype(jnp.bfloat16),
        "b3p": pad(b3, 1, pc),
        "out_dim": int(out_dim),
    }


# ----------------------------------------------------------------------------
# Full forward (training branch), single-device (all_gather == identity)
# ----------------------------------------------------------------------------
def simclr_classifier_scl_forward(q, indices1, indices2, label, params, *,
                                  temperature, a, d, AA=False,
                                  only_classifier=False, esp=1e-6):
    del indices2  # unused in the loss path (mirrors the reference forward)
    B, D = q.shape
    k = jax.lax.stop_gradient(q)      # k = q.clone().detach(); all_gather == id
    k_label = label

    cls_target = indices1 if AA else label
    lab_col = label.reshape(B, 1).astype(jnp.int32)
    lab_row = label.reshape(1, B).astype(jnp.int32)
    cls_col = cls_target.reshape(B, 1).astype(jnp.int32)

    C = params["out_dim"]
    p1 = params["W1p"].shape[1]
    p2 = params["W2p"].shape[1]
    pc = params["W3p"].shape[1]

    kernel = functools.partial(_fused_kernel,
                               float(1.0 / temperature), float(esp), int(C))

    out_padded, loss_vec = pl.pallas_call(
        kernel,
        grid=(1,),
        in_specs=[
            pl.BlockSpec((B, D), lambda i: (0, 0)),     # q
            pl.BlockSpec((B, 1), lambda i: (0, 0)),     # labels (column)
            pl.BlockSpec((1, B), lambda i: (0, 0)),     # labels (row)
            pl.BlockSpec((B, 1), lambda i: (0, 0)),     # classifier target
            pl.BlockSpec((D, p1), lambda i: (0, 0)),    # W1 (padded, bf16)
            pl.BlockSpec((1, p1), lambda i: (0, 0)),    # b1
            pl.BlockSpec((p1, p2), lambda i: (0, 0)),   # W2
            pl.BlockSpec((1, p2), lambda i: (0, 0)),    # b2
            pl.BlockSpec((p2, pc), lambda i: (0, 0)),   # W3
            pl.BlockSpec((1, pc), lambda i: (0, 0)),    # b3
        ],
        out_specs=(
            pl.BlockSpec((B, pc), lambda i: (0, 0)),
            pl.BlockSpec((1, LANE), lambda i: (0, 0)),
        ),
        out_shape=(
            jax.ShapeDtypeStruct((B, pc), jnp.float32),
            jax.ShapeDtypeStruct((1, LANE), jnp.float32),
        ),
    )(q, lab_col, lab_row, cls_col,
      params["W1p"], params["b1p"], params["W2p"], params["b2p"],
      params["W3p"], params["b3p"])

    out = out_padded[:, :C]
    loss_classify = loss_vec[0, 1]
    loss_label = jnp.float32(0.0) if only_classifier else loss_vec[0, 0]
    loss = a * loss_label + d * loss_classify
    # training return of the reference: (loss, loss_label, loss_classify, k, k_label)
    return loss, loss_label, loss_classify, k, k_label, out


# ----------------------------------------------------------------------------
if __name__ == "__main__":
    B = 8                 # batch size
    D = 128               # opt.projection_size
    C = 8                 # opt.classifier_dim
    temperature = 0.07    # opt.temperature
    a_coef, d_coef = 1.0, 1.0

    key = jax.random.PRNGKey(0)
    k_q, k_lab, k_i1, k_i2, k_params = jax.random.split(key, 5)

    q = jax.random.normal(k_q, (B, D), jnp.float32)          # encoder output
    label = jax.random.randint(k_lab, (B,), 0, C, jnp.int32)
    indices1 = jax.random.randint(k_i1, (B,), 0, C, jnp.int32)
    indices2 = jax.random.randint(k_i2, (B,), 0, C, jnp.int32)
    params = init_classifier_params(k_params, D, C)

    outs = simclr_classifier_scl_forward(
        q, indices1, indices2, label, params,
        temperature=temperature, a=a_coef, d=d_coef)
    outs = jax.block_until_ready(outs)

    loss, loss_label, loss_classify, k, k_label, out = outs
    assert out.shape == (B, C)
    assert k.shape == (B, D) and k_label.shape == (B,)
    assert jnp.isfinite(loss) and jnp.isfinite(loss_label) and jnp.isfinite(loss_classify)
    print("KERNEL_OK")
</pallas_src>

<mosaic_0001>
module attributes {stable_mosaic.version = 11 : i64} {
  func.func @_fused_kernel(%arg0: i32, %arg1: memref<8x128xf32, #tpu.memory_space<vmem>>, %arg2: memref<8x1xi32, #tpu.memory_space<vmem>>, %arg3: memref<1x8xi32, #tpu.memory_space<vmem>>, %arg4: memref<8x1xi32, #tpu.memory_space<vmem>>, %arg5: memref<128x128xbf16, #tpu.memory_space<vmem>>, %arg6: memref<1x128xf32, #tpu.memory_space<vmem>>, %arg7: memref<128x128xbf16, #tpu.memory_space<vmem>>, %arg8: memref<1x128xf32, #tpu.memory_space<vmem>>, %arg9: memref<128x128xbf16, #tpu.memory_space<vmem>>, %arg10: memref<1x128xf32, #tpu.memory_space<vmem>>, %arg11: memref<8x128xf32, #tpu.memory_space<vmem>>, %arg12: memref<1x128xf32, #tpu.memory_space<vmem>>) attributes {dimension_semantics = [#tpu.dimension_semantics<arbitrary>], iteration_bounds = array<i64: 1>, scalar_prefetch = 0 : i64, scratch_operands = 0 : i64, tpu.core_type = #tpu.core_type<tc>, window_params = [{pipeline_mode = #tpu.pipeline_mode<synchronous>, transform_indices = @transform_0, window_bounds = array<i64: 8, 128>}, {pipeline_mode = #tpu.pipeline_mode<synchronous>, transform_indices = @transform_1, window_bounds = array<i64: 8, 1>}, {pipeline_mode = #tpu.pipeline_mode<synchronous>, transform_indices = @transform_2, window_bounds = array<i64: 1, 8>}, {pipeline_mode = #tpu.pipeline_mode<synchronous>, transform_indices = @transform_3, window_bounds = array<i64: 8, 1>}, {pipeline_mode = #tpu.pipeline_mode<synchronous>, transform_indices = @transform_4, window_bounds = array<i64: 128, 128>}, {pipeline_mode = #tpu.pipeline_mode<synchronous>, transform_indices = @transform_5, window_bounds = array<i64: 1, 128>}, {pipeline_mode = #tpu.pipeline_mode<synchronous>, transform_indices = @transform_6, window_bounds = array<i64: 128, 128>}, {pipeline_mode = #tpu.pipeline_mode<synchronous>, transform_indices = @transform_7, window_bounds = array<i64: 1, 128>}, {pipeline_mode = #tpu.pipeline_mode<synchronous>, transform_indices = @transform_8, window_bounds = array<i64: 128, 128>}, {pipeline_mode = #tpu.pipeline_mode<synchronous>, transform_indices = @transform_9, window_bounds = array<i64: 1, 128>}, {pipeline_mode = #tpu.pipeline_mode<synchronous>, transform_indices = @transform_10, window_bounds = array<i64: 8, 128>}, {pipeline_mode = #tpu.pipeline_mode<synchronous>, transform_indices = @transform_11, window_bounds = array<i64: 1, 128>}]} {
    %c0 = arith.constant 0 : index
    %c0_0 = arith.constant 0 : index
    %0 = vector.load %arg1[%c0, %c0_0] : memref<8x128xf32, #tpu.memory_space<vmem>>, vector<8x128xf32>
    %1 = arith.mulf %0, %0 : vector<8x128xf32>
    %cst = arith.constant dense<0.000000e+00> : vector<8xf32>
    %2 = vector.multi_reduction <add>, %1, %cst [1] : vector<8x128xf32> to vector<8xf32>
    %3 = vector.shape_cast %2 : vector<8xf32> to vector<8x1xf32>
    %cst_1 = arith.constant 1.000000e-24 : f32
    %4 = vector.broadcast %cst_1 : f32 to vector<8x1xf32>
    %5 = arith.maximumf %3, %4 : vector<8x1xf32>
    %6 = math.rsqrt %5 : vector<8x1xf32>
    %7 = vector.broadcast %6 : vector<8x1xf32> to vector<8x128xf32>
    %8 = arith.mulf %0, %7 : vector<8x128xf32>
    %9 = arith.truncf %8 : vector<8x128xf32> to vector<8x128xbf16>
    %cst_2 = arith.constant dense<0.000000e+00> : vector<8x8xf32>
    %10 = tpu.matmul %9, %9, %cst_2 {dimension_numbers = #tpu.dot_dimension_numbers<[1], [1], [0], [0], [0, 0, 1, 0], [], []>} : vector<8x128xbf16>, vector<8x128xbf16>, vector<8x8xf32> -> vector<8x8xf32>
    %cst_3 = arith.constant 14.2857141 : f32
    %11 = vector.broadcast %cst_3 : f32 to vector<8x8xf32>
    %12 = arith.mulf %10, %11 : vector<8x8xf32>
    %c0_4 = arith.constant 0 : index
    %c0_5 = arith.constant 0 : index
    %13 = vector.load %arg2[%c0_4, %c0_5] : memref<8x1xi32, #tpu.memory_space<vmem>>, vector<8x1xi32>
    %c0_6 = arith.constant 0 : index
    %c0_7 = arith.constant 0 : index
    %14 = vector.load %arg3[%c0_6, %c0_7] : memref<1x8xi32, #tpu.memory_space<vmem>>, vector<1x8xi32>
    %15 = vector.broadcast %13 : vector<8x1xi32> to vector<8x8xi32>
    %16 = vector.broadcast %14 : vector<1x8xi32> to vector<8x8xi32>
    %17 = arith.cmpi eq, %15, %16 : vector<8x8xi32>
    %18 = arith.extui %17 : vector<8x8xi1> to vector<8x8xi32>
    %19 = arith.sitofp %18 : vector<8x8xi32> to vector<8x8xf32>
    %20 = arith.mulf %12, %19 : vector<8x8xf32>
    %cst_8 = arith.constant dense<0.000000e+00> : vector<8xf32>
    %21 = vector.multi_reduction <add>, %20, %cst_8 [1] : vector<8x8xf32> to vector<8xf32>
    %22 = vector.shape_cast %21 : vector<8xf32> to vector<8x1xf32>
    %cst_9 = arith.constant dense<0.000000e+00> : vector<8xf32>
    %23 = vector.multi_reduction <add>, %19, %cst_9 [1] : vector<8x8xf32> to vector<8xf32>
    %24 = vector.shape_cast %23 : vector<8xf32> to vector<8x1xf32>
    %cst_10 = arith.constant 9.99999997E-7 : f32
    %25 = vector.broadcast %cst_10 : f32 to vector<8x1xf32>
    %26 = arith.maximumf %24, %25 : vector<8x1xf32>
    %27 = arith.divf %22, %26 : vector<8x1xf32>
    %cst_11 = arith.constant 1.000000e+00 : f32
    %28 = vector.broadcast %cst_11 : f32 to vector<8x8xf32>
    %29 = arith.subf %28, %19 : vector<8x8xf32>
    %30 = arith.mulf %12, %29 : vector<8x8xf32>
    %cst_12 = arith.constant dense<0xFF800000> : vector<8xf32>
    %31 = vector.multi_reduction <maximumf>, %30, %cst_12 [1] : vector<8x8xf32> to vector<8xf32>
    %32 = vector.shape_cast %31 : vector<8xf32> to vector<8x1xf32>
    %33 = arith.maximumf %27, %32 : vector<8x1xf32>
    %34 = arith.subf %27, %33 : vector<8x1xf32>
    %35 = math.exp %34 : vector<8x1xf32>
    %36 = vector.broadcast %33 : vector<8x1xf32> to vector<8x8xf32>
    %37 = arith.subf %30, %36 : vector<8x8xf32>
    %38 = math.exp %37 : vector<8x8xf32>
    %cst_13 = arith.constant dense<0.000000e+00> : vector<8xf32>
    %39 = vector.multi_reduction <add>, %38, %cst_13 [1] : vector<8x8xf32> to vector<8xf32>
    %40 = vector.shape_cast %39 : vector<8xf32> to vector<8x1xf32>
    %41 = arith.addf %35, %40 : vector<8x1xf32>
    %42 = math.log %41 : vector<8x1xf32>
    %43 = arith.addf %42, %33 : vector<8x1xf32>
    %44 = arith.subf %43, %27 : vector<8x1xf32>
    %45 = vector.shape_cast %44 : vector<8x1xf32> to vector<1x8x1xf32>
    %cst_14 = arith.constant dense<0.000000e+00> : vector<1xf32>
    %46 = vector.multi_reduction <add>, %45, %cst_14 [1, 2] : vector<1x8x1xf32> to vector<1xf32>
    %47 = vector.shape_cast %46 : vector<1xf32> to vector<1x1x1xf32>
    %48 = vector.extract %47[0, 0, 0] : f32 from vector<1x1x1xf32>
    %cst_15 = arith.constant 8.000000e+00 : f32
    %49 = arith.divf %48, %cst_15 : f32
    %50 = arith.truncf %0 : vector<8x128xf32> to vector<8x128xbf16>
    %c0_16 = arith.constant 0 : index
    %c0_17 = arith.constant 0 : index
    %51 = vector.load %arg5[%c0_16, %c0_17] : memref<128x128xbf16, #tpu.memory_space<vmem>>, vector<128x128xbf16>
    %cst_18 = arith.constant dense<0.000000e+00> : vector<8x128xf32>
    %52 = tpu.matmul %50, %51, %cst_18 {dimension_numbers = #tpu.dot_dimension_numbers<[1], [0], [0], [1], [0, 0, 1, 1], [], []>} : vector<8x128xbf16>, vector<128x128xbf16>, vector<8x128xf32> -> vector<8x128xf32>
    %c0_19 = arith.constant 0 : index
    %c0_20 = arith.constant 0 : index
    %53 = vector.load %arg6[%c0_19, %c0_20] : memref<1x128xf32, #tpu.memory_space<vmem>>, vector<1x128xf32>
    %54 = vector.broadcast %53 : vector<1x128xf32> to vector<8x128xf32>
    %55 = arith.addf %52, %54 : vector<8x128xf32>
    %56 = math.tanh %55 : vector<8x128xf32>
    %57 = arith.truncf %56 : vector<8x128xf32> to vector<8x128xbf16>
    %c0_21 = arith.constant 0 : index
    %c0_22 = arith.constant 0 : index
    %58 = vector.load %arg7[%c0_21, %c0_22] : memref<128x128xbf16, #tpu.memory_space<vmem>>, vector<128x128xbf16>
    %cst_23 = arith.constant dense<0.000000e+00> : vector<8x128xf32>
    %59 = tpu.matmul %57, %58, %cst_23 {dimension_numbers = #tpu.dot_dimension_numbers<[1], [0], [0], [1], [0, 0, 1, 1], [], []>} : vector<8x128xbf16>, vector<128x128xbf16>, vector<8x128xf32> -> vector<8x128xf32>
    %c0_24 = arith.constant 0 : index
    %c0_25 = arith.constant 0 : index
    %60 = vector.load %arg8[%c0_24, %c0_25] : memref<1x128xf32, #tpu.memory_space<vmem>>, vector<1x128xf32>
    %61 = vector.broadcast %60 : vector<1x128xf32> to vector<8x128xf32>
    %62 = arith.addf %59, %61 : vector<8x128xf32>
    %63 = math.tanh %62 : vector<8x128xf32>
    %64 = arith.truncf %63 : vector<8x128xf32> to vector<8x128xbf16>
    %c0_26 = arith.constant 0 : index
    %c0_27 = arith.constant 0 : index
    %65 = vector.load %arg9[%c0_26, %c0_27] : memref<128x128xbf16, #tpu.memory_space<vmem>>, vector<128x128xbf16>
    %cst_28 = arith.constant dense<0.000000e+00> : vector<8x128xf32>
    %66 = tpu.matmul %64, %65, %cst_28 {dimension_numbers = #tpu.dot_dimension_numbers<[1], [0], [0], [1], [0, 0, 1, 1], [], []>} : vector<8x128xbf16>, vector<128x128xbf16>, vector<8x128xf32> -> vector<8x128xf32>
    %c0_29 = arith.constant 0 : index
    %c0_30 = arith.constant 0 : index
    %67 = vector.load %arg10[%c0_29, %c0_30] : memref<1x128xf32, #tpu.memory_space<vmem>>, vector<1x128xf32>
    %68 = vector.broadcast %67 : vector<1x128xf32> to vector<8x128xf32>
    %69 = arith.addf %66, %68 : vector<8x128xf32>
    %c0_31 = arith.constant 0 : index
    %c0_32 = arith.constant 0 : index
    %70 = vector.load %arg11[%c0_31, %c0_32] : memref<8x128xf32, #tpu.memory_space<vmem>>, vector<8x128xf32>
    tpu.vector_store %arg11[%c0_31, %c0_32], %69 {strides = array<i32>} : memref<8x128xf32, #tpu.memory_space<vmem>>, vector<8x128xf32>,
    %71 = tpu.iota {dimensions = array<i32: 1>} : vector<8x128xi32>
    %c8_i32 = arith.constant 8 : i32
    %72 = vector.broadcast %c8_i32 : i32 to vector<8x128xi32>
    %73 = arith.cmpi slt, %71, %72 : vector<8x128xi32>
    %cst_33 = arith.constant -1.000000e+30 : f32
    %74 = vector.broadcast %cst_33 : f32 to vector<8x128xf32>
    %75 = arith.select %73, %69, %74 : vector<8x128xi1>, vector<8x128xf32>
    %cst_34 = arith.constant dense<0xFF800000> : vector<8xf32>
    %76 = vector.multi_reduction <maximumf>, %75, %cst_34 [1] : vector<8x128xf32> to vector<8xf32>
    %77 = vector.shape_cast %76 : vector<8xf32> to vector<8x1xf32>
    %78 = vector.broadcast %77 : vector<8x1xf32> to vector<8x128xf32>
    %79 = arith.subf %75, %78 : vector<8x128xf32>
    %80 = math.exp %79 : vector<8x128xf32>
    %cst_35 = arith.constant dense<0.000000e+00> : vector<8xf32>
    %81 = vector.multi_reduction <add>, %80, %cst_35 [1] : vector<8x128xf32> to vector<8xf32>
    %82 = vector.shape_cast %81 : vector<8xf32> to vector<8x1xf32>
    %83 = math.log %82 : vector<8x1xf32>
    %84 = arith.addf %83, %77 : vector<8x1xf32>
    %c0_36 = arith.constant 0 : index
    %c0_37 = arith.constant 0 : index
    %85 = vector.load %arg4[%c0_36, %c0_37] : memref<8x1xi32, #tpu.memory_space<vmem>>, vector<8x1xi32>
    %86 = vector.broadcast %85 : vector<8x1xi32> to vector<8x128xi32>
    %87 = arith.cmpi eq, %71, %86 : vector<8x128xi32>
    %88 = arith.extui %87 : vector<8x128xi1> to vector<8x128xi32>
    %89 = arith.sitofp %88 : vector<8x128xi32> to vector<8x128xf32>
    %90 = arith.mulf %69, %89 : vector<8x128xf32>
    %cst_38 = arith.constant dense<0.000000e+00> : vector<8xf32>
    %91 = vector.multi_reduction <add>, %90, %cst_38 [1] : vector<8x128xf32> to vector<8xf32>
    %92 = vector.shape_cast %91 : vector<8xf32> to vector<8x1xf32>
    %93 = arith.subf %84, %92 : vector<8x1xf32>
    %94 = vector.shape_cast %93 : vector<8x1xf32> to vector<1x8x1xf32>
    %cst_39 = arith.constant dense<0.000000e+00> : vector<1xf32>
    %95 = vector.multi_reduction <add>, %94, %cst_39 [1, 2] : vector<1x8x1xf32> to vector<1xf32>
    %96 = vector.shape_cast %95 : vector<1xf32> to vector<1x1x1xf32>
    %97 = vector.extract %96[0, 0, 0] : f32 from vector<1x1x1xf32>
    %cst_40 = arith.constant 8.000000e+00 : f32
    %98 = arith.divf %97, %cst_40 : f32
    %99 = tpu.iota {dimensions = array<i32: 1>} : vector<1x128xi32>
    %c0_i32 = arith.constant 0 : i32
    %100 = vector.broadcast %c0_i32 : i32 to vector<1x128xi32>
    %101 = arith.cmpi eq, %99, %100 : vector<1x128xi32>
    %102 = arith.extui %101 : vector<1x128xi1> to vector<1x128xi32>
    %103 = arith.sitofp %102 : vector<1x128xi32> to vector<1x128xf32>
    %104 = vector.broadcast %49 : f32 to vector<1x128xf32>
    %105 = arith.mulf %104, %103 : vector<1x128xf32>
    %c1_i32 = arith.constant 1 : i32
    %106 = vector.broadcast %c1_i32 : i32 to vector<1x128xi32>
    %107 = arith.cmpi eq, %99, %106 : vector<1x128xi32>
    %108 = arith.extui %107 : vector<1x128xi1> to vector<1x128xi32>
    %109 = arith.sitofp %108 : vector<1x128xi32> to vector<1x128xf32>
    %110 = vector.broadcast %98 : f32 to vector<1x128xf32>
    %111 = arith.mulf %110, %109 : vector<1x128xf32>
    %112 = arith.addf %105, %111 : vector<1x128xf32>
    %c0_41 = arith.constant 0 : index
    %c0_42 = arith.constant 0 : index
    %113 = vector.load %arg12[%c0_41, %c0_42] : memref<1x128xf32, #tpu.memory_space<vmem>>, vector<1x128xf32>
    tpu.vector_store %arg12[%c0_41, %c0_42], %112 {strides = array<i32>} : memref<1x128xf32, #tpu.memory_space<vmem>>, vector<1x128xf32>,
    return
  }
  func.func @transform_0(%arg0: i32) -> (i32, i32) {
    %c0_i32 = arith.constant 0 : i32
    %c0_i32_0 = arith.constant 0 : i32
    %c0_i32_1 = arith.constant 0 : i32
    return %c0_i32, %c0_i32_0 : i32, i32
  }
  func.func @transform_1(%arg0: i32) -> (i32, i32) {
    %c0_i32 = arith.constant 0 : i32
    %c0_i32_0 = arith.constant 0 : i32
    %c0_i32_1 = arith.constant 0 : i32
    return %c0_i32, %c0_i32_0 : i32, i32
  }
  func.func @transform_2(%arg0: i32) -> (i32, i32) {
    %c0_i32 = arith.constant 0 : i32
    %c0_i32_0 = arith.constant 0 : i32
    %c0_i32_1 = arith.constant 0 : i32
    return %c0_i32, %c0_i32_0 : i32, i32
  }
  func.func @transform_3(%arg0: i32) -> (i32, i32) {
    %c0_i32 = arith.constant 0 : i32
    %c0_i32_0 = arith.constant 0 : i32
    %c0_i32_1 = arith.constant 0 : i32
    return %c0_i32, %c0_i32_0 : i32, i32
  }
  func.func @transform_4(%arg0: i32) -> (i32, i32) {
    %c0_i32 = arith.constant 0 : i32
    %c0_i32_0 = arith.constant 0 : i32
    %c0_i32_1 = arith.constant 0 : i32
    return %c0_i32, %c0_i32_0 : i32, i32
  }
  func.func @transform_5(%arg0: i32) -> (i32, i32) {
    %c0_i32 = arith.constant 0 : i32
    %c0_i32_0 = arith.constant 0 : i32
    %c0_i32_1 = arith.constant 0 : i32
    return %c0_i32, %c0_i32_0 : i32, i32
  }
  func.func @transform_6(%arg0: i32) -> (i32, i32) {
    %c0_i32 = arith.constant 0 : i32
    %c0_i32_0 = arith.constant 0 : i32
    %c0_i32_1 = arith.constant 0 : i32
    return %c0_i32, %c0_i32_0 : i32, i32
  }
  func.func @transform_7(%arg0: i32) -> (i32, i32) {
    %c0_i32 = arith.constant 0 : i32
    %c0_i32_0 = arith.constant 0 : i32
    %c0_i32_1 = arith.constant 0 : i32
    return %c0_i32, %c0_i32_0 : i32, i32
  }
  func.func @transform_8(%arg0: i32) -> (i32, i32) {
    %c0_i32 = arith.constant 0 : i32
    %c0_i32_0 = arith.constant 0 : i32
    %c0_i32_1 = arith.constant 0 : i32
    return %c0_i32, %c0_i32_0 : i32, i32
  }
  func.func @transform_9(%arg0: i32) -> (i32, i32) {
    %c0_i32 = arith.constant 0 : i32
    %c0_i32_0 = arith.constant 0 : i32
    %c0_i32_1 = arith.constant 0 : i32
    return %c0_i32, %c0_i32_0 : i32, i32
  }
  func.func @transform_10(%arg0: i32) -> (i32, i32) {
    %c0_i32 = arith.constant 0 : i32
    %c0_i32_0 = arith.constant 0 : i32
    %c0_i32_1 = arith.constant 0 : i32
    return %c0_i32, %c0_i32_0 : i32, i32
  }
  func.func @transform_11(%arg0: i32) -> (i32, i32) {
    %c0_i32 = arith.constant 0 : i32
    %c0_i32_0 = arith.constant 0 : i32
    %c0_i32_1 = arith.constant 0 : i32
    return %c0_i32, %c0_i32_0 : i32, i32
  }
}

</mosaic_0001>

<bundles_post_ra>
// kernel: tpu_custom_call.1
= control target key start
LH: loop header
LB: loop body
LE: loop exit
PB: predicated region body
PF: predicated region fallthrough
CT: control target
= control target key end

     0   :  { %17 = vsyncpa [#allocation3], 0  ;;  %s1123_s0 = inlined_call_operand.vmem [shape: f32[8,128], index: 0, kind: input, shape index: {}]   ;;  %s1124_s1 = inlined_call_operand.vmem [shape: s32[8,1], index: 1, kind: input, shape index: {}]   ;;  %s1125_s2 = inlined_call_operand.vmem [shape: s32[1,8], index: 2, kind: input, shape index: {}]   ;;  %s1126_s3 = inlined_call_operand.vmem [shape: s32[8,1], index: 3, kind: input, shape index: {}]   ;;  %s1127_s4 = inlined_call_operand.hbm [shape: bf16[128,128], index: 4, kind: input, shape index: {}]   ;;  %s1128_s5 = inlined_call_operand.vmem [shape: f32[1,128], index: 5, kind: input, shape index: {}]   ;;  %s1129_s6 = inlined_call_operand.hbm [shape: bf16[128,128], index: 6, kind: input, shape index: {}]   ;;  %s1130_s7 = inlined_call_operand.vmem [shape: f32[1,128], index: 7, kind: input, shape index: {}]   ;;  %s1131_s8 = inlined_call_operand.hbm [shape: bf16[128,128], index: 8, kind: input, shape index: {}]   ;;  %s1132_s9 = inlined_call_operand.vmem [shape: f32[1,128], index: 9, kind: input, shape index: {}]   ;;  %s1133_s10 = inlined_call_operand.hbm [shape: f32[8,128], index: 10, kind: output, shape index: {0}]   ;;  %s1134_s11 = inlined_call_operand.hbm [shape: f32[1,128], index: 11, kind: output, shape index: {1}]  }
   0x1   :  { %18 = vsyncpa [#allocation6], 0 }
   0x2   :  { %19 = vsyncpa [#allocation4], 0 }
   0x3   :  { %20 = vsyncpa [#allocation10], 0  ;;  %s909_s17 = smov [#allocation5]   ;;  %s910_s19 = smov [#allocation2]  }
   0x4   :  { %s48_s18 = sshll.u32 %s909_s17, 4  ;;  %s34_s20 = sshll.u32 %s910_s19, 4  ;;  %s49_s18 = int_to_ptr.vmem [resolvable:$true] %s48_s18  ;;  %s979_s20 = int_to_ptr.vmem [resolvable:$true] %s34_s20 }
   0x5   :  { %s791_s23 = scalar_lea.hbm %s1129_s6, 1024 }
   0x6   :  { %p792_p0 = scmp.ne.s32.totalorder %s1129_s6, %s791_s23  ;;  %p795_p1 = scmp.lt.u32.totalorder %s791_s23, %s1129_s6 }
   0x8   :  { %p797_p2 = pnand %p795_p1, %p792_p0 }
   0xa   :  { %800 = shalt.err (!%p797_p2)
}
   0xb   :  { %s801_s28 = scalar_lea.vmem %s49_s18, 1024  ;;  %p806_p4 = scmp.lt.s32.totalorder %s49_s18, %s49_s18 }
   0xc   :  { %p802_p3 = scmp.ne.s32.totalorder %s49_s18, %s801_s28  ;;  %p807_p5 = scmp.lt.s32.totalorder %s801_s28, %s801_s28 }
   0xe   :  { %p808_p6 = por %p807_p5, %p806_p4 }
  0x10   :  { %p809_p7 = pnand %p808_p6, %p802_p3 }
  0x12   :  { %812 = shalt.err (!%p809_p7)
}
  0x13   :  { %s911_s29 = smov 64   ;;  %s912_s30 = smov 4  }
  0x14   :  { %54 = dma.hbm_to_vmem [thread:$0]  %s1129_s6, 1024, %s49_s18, [#allocation6], %s911_s29, %s911_s29, %s912_s30  }
  0x15   :  { %s813_s16 = scalar_lea.hbm %s1127_s4, 1024 }
  0x16   :  { %p814_p8 = scmp.ne.s32.totalorder %s1127_s4, %s813_s16  ;;  %p817_p9 = scmp.lt.u32.totalorder %s813_s16, %s1127_s4 }
  0x18   :  { %p819_p10 = pnand %p817_p9, %p814_p8 }
  0x1a   :  { %822 = shalt.err (!%p819_p10)
}
  0x1b   :  { %s823_s23 = scalar_lea.vmem %s979_s20, 1024  ;;  %p828_p12 = scmp.lt.s32.totalorder %s979_s20, %s979_s20 }
  0x1c   :  { %p824_p11 = scmp.ne.s32.totalorder %s979_s20, %s823_s23  ;;  %p829_p13 = scmp.lt.s32.totalorder %s823_s23, %s823_s23 }
  0x1e   :  { %p830_p0 = por %p829_p13, %p828_p12 }
  0x20   :  { %p831_p1 = pnand %p830_p0, %p824_p11 }
  0x22   :  { %834 = shalt.err (!%p831_p1)
}
  0x23   :  { %40 = dma.hbm_to_vmem [thread:$0]  %s1127_s4, 1024, %s979_s20, [#allocation3], %s911_s29, %s911_s29, %s912_s30  }
  0x24   :  { %s913_s24 = smov [#allocation7]   ;;  %s835_s28 = scalar_lea.hbm %s1131_s8, 1024 }
  0x25   :  { %s62_s25 = sshll.u32 %s913_s24, 4  ;;  %p836_p2 = scmp.ne.s32.totalorder %s1131_s8, %s835_s28  ;;  %s63_s25 = int_to_ptr.vmem [resolvable:$true] %s62_s25 }
  0x26   :  { %p839_p3 = scmp.lt.u32.totalorder %s835_s28, %s1131_s8 }
  0x28   :  { %p841_p4 = pnand %p839_p3, %p836_p2 }
  0x2a   :  { %844 = shalt.err (!%p841_p4)
}
  0x2b   :  { %s845_s16 = scalar_lea.vmem %s63_s25, 1024  ;;  %p850_p6 = scmp.lt.s32.totalorder %s63_s25, %s63_s25 }
  0x2c   :  { %p846_p5 = scmp.ne.s32.totalorder %s63_s25, %s845_s16  ;;  %p851_p7 = scmp.lt.s32.totalorder %s845_s16, %s845_s16 }
  0x2e   :  { %p852_p8 = por %p851_p7, %p850_p6 }
  0x30   :  { %p853_p9 = pnand %p852_p8, %p846_p5 }
  0x32   :  { %856 = shalt.err (!%p853_p9)
}
  0x33   :  { %68 = dma.hbm_to_vmem [thread:$0]  %s1131_s8, 1024, %s63_s25, [#allocation6], %s911_s29, %s911_s29, %s912_s30  }
  0x34   :  { %901 = dma.done.wait [#allocation3], 1024  }
  0x35   :  { %902 = vsyncadd [#allocation3], 4294966272 }
  0x36   :  { %903 = dma.done.wait [#allocation6], 2048  }
  0x37   :  { %904 = vsyncadd [#allocation6], 4294965248  ;;  %v914_v0 = vmov 0.0   ;;  %vm915_vm0 = vmmov 0   ;;  %v749_v1 = vld [vmem:[#allocation2] sm:$0xff]   ;;  %v750_v4 = vld [vmem:[#allocation2 + $0x8] sm:$0xff]  }
  0x38   :  { %673 = vmatprep.subr.bf16.mxu1 %v914_v0  ;;  %689 = vmatprep.mubr.msk.bf16.mxu1 %vm915_vm0, %v914_v0  ;;  %v81_v2 = vld [vmem:[%s1123_s0] sm:$0xff]  ;;  %v751_v5 = vld [vmem:[#allocation2 + $0x10] sm:$0xff]   ;;  %v752_v6 = vld [vmem:[#allocation2 + $0x18] sm:$0xff]   ;;  %v916_v13 = vmov 0   ;;  %vm143_vm1 = vcmask 64512   ;;  %vm173_vm5 = vcmask 7168  }
  0x39   :  { %667 = vmatprep.subr.bf16.mxu0 %v914_v0  ;;  %669 = vmatprep.mubr.msk.bf16.mxu0 %vm915_vm0, %v914_v0  ;;  %v82_v3 = vmul.f32 %v81_v2, %v81_v2  ;;  %v753_v7 = vld [vmem:[#allocation2 + $0x20] sm:$0xff]   ;;  %v754_v8 = vld [vmem:[#allocation2 + $0x28] sm:$0xff]   ;;  %v755_v9 = vld [vmem:[#allocation2 + $0x30] sm:$0xff]   ;;  %v187_v11 = vpack.c.bf16 %v81_v2, %v81_v2 }
  0x3a   :  { %674 = vmatpush3.bf16.msra.mxu1 %v749_v1  ;;  %v756_v10 = vld [vmem:[#allocation2 + $0x38] sm:$0xff]   ;;  %v130_v12 = vld [vmem:[%s1124_s1] sm:$0xff]  ;;  %747 = vset.pattern.permute.xlu0 %v916_v13  ;;  %v758_v20 = vld [vmem:[#allocation5 + $0x8] sm:$0xff]  }
  0x3b   :  { %675 = vmatprep.subr.bf16.mxu1 %v914_v0  ;;  %83 = vadd.xlane.f32.xlu0 %v82_v3  ;;  %v757_v19 = vld [vmem:[#allocation5] sm:$0xff]   ;;  %v759_v21 = vld [vmem:[#allocation5 + $0x10] sm:$0xff]   ;;  %v760_v22 = vld [vmem:[#allocation5 + $0x18] sm:$0xff]  }
  0x3c   :  { %748 = vset.pattern.permute.xlu1 %v916_v13  ;;  %v606_v23 = vld [vmem:[%s1125_s2] ss:$0 sm:$0xff]  ;;  %v762_v27 = vld [vmem:[#allocation5 + $0x28] sm:$0xff]   ;;  %v763_v29 = vld [vmem:[#allocation5 + $0x30] sm:$0xff]  }
  0x3d   :  { %v761_v24 = vld [vmem:[#allocation5 + $0x20] sm:$0xff]   ;;  %v764_v30 = vld [vmem:[#allocation5 + $0x38] sm:$0xff]   ;;  %v766_v40 = vld [vmem:[#allocation7 + $0x8] sm:$0xff]  }
  0x3e   :  { %676 = vmatpush3.bf16.msra.mxu1 %v750_v4  ;;  %v608_v31 = vld [vmem:[%s1128_s5] ss:$0 sm:$0xff]  ;;  %v767_v41 = vld [vmem:[#allocation7 + $0x10] sm:$0xff]   ;;  %v768_v42 = vld [vmem:[#allocation7 + $0x18] sm:$0xff]  }
  0x3f   :  { %677 = vmatprep.subr.bf16.mxu1 %v914_v0  ;;  %v765_v39 = vld [vmem:[#allocation7] sm:$0xff]   ;;  %v770_v44 = vld [vmem:[#allocation7 + $0x28] sm:$0xff]   ;;  %v771_v45 = vld [vmem:[#allocation7 + $0x30] sm:$0xff]  }
  0x40   :  { %v769_v43 = vld [vmem:[#allocation7 + $0x20] sm:$0xff]   ;;  %v772_v46 = vld [vmem:[#allocation7 + $0x38] sm:$0xff]  }
  0x41   :  { %v617_v57 = vld [vmem:[%s1130_s7] ss:$0 sm:$0xff] }
  0x42   :  { %678 = vmatpush3.bf16.msra.mxu1 %v751_v5  ;;  %v626_v4 = vld [vmem:[%s1132_s9] ss:$0 sm:$0xff] }
  0x43   :  { %679 = vmatprep.subr.bf16.mxu1 %v914_v0  ;;  %v540_v13 = vld [vmem:[%s1126_s3] sm:$0xff]  ;;  %s917_s3 = smov [#allocation8]  }
  0x44   :  { %s582_s9 = sshll.u32 %s917_s3, 4  ;;  %s583_s9 = int_to_ptr.vmem [resolvable:$true] %s582_s9 }
  0x45   :  { %s857_s18 = scalar_lea.vmem %s583_s9, 128  ;;  %p862_p11 = scmp.lt.s32.totalorder %s583_s9, %s583_s9 }
  0x46   :  { %680 = vmatpush3.bf16.msra.mxu1 %v752_v6  ;;  %p858_p10 = scmp.ne.s32.totalorder %s583_s9, %s857_s18  ;;  %p863_p12 = scmp.lt.s32.totalorder %s857_s18, %s857_s18 }
  0x47   :  { %681 = vmatprep.subr.bf16.mxu1 %v914_v0 }
  0x48   :  { %p864_p13 = por %p863_p12, %p862_p11 }
  0x4a   :  { %682 = vmatpush3.bf16.msra.mxu1 %v753_v7  ;;  %p865_p0 = pnand %p864_p13, %p858_p10 }
  0x4b   :  { %683 = vmatprep.subr.bf16.mxu1 %v914_v0 }
  0x4e   :  { %684 = vmatpush3.bf16.msra.mxu1 %v754_v8 }
  0x4f   :  { %685 = vmatprep.subr.bf16.mxu1 %v914_v0 }
  0x51   :  { %133 = vperm.xlu0 %747, %v130_v12  }
  0x52   :  { %686 = vmatpush3.bf16.msra.mxu1 %v755_v9 }
  0x53   :  { %687 = vmatprep.subr.bf16.mxu1 %v914_v0 }
  0x56   :  { %688 = vmatpush3.bf16.msra.mxu1 %v756_v10 }
  0x57   :  { %713 = vmatprep.subr.bf16.mxu1 %v914_v0 }
  0x59   :  { %690 = vmatmul.mubr.bf16.vlgmr.msra.gmra.mrb[0].mxu1 %v187_v11 }
  0x5a   :  { %729 = vmatprep.mubr.msk.bf16.mxu1 %vm915_vm0, %v914_v0  ;;  %714 = vmatpush3.bf16.msra.mxu1 %v765_v39 }
  0x5b   :  { %715 = vmatprep.subr.bf16.mxu1 %v914_v0 }
  0x5e   :  { %716 = vmatpush3.bf16.msra.mxu1 %v766_v40 }
  0x5f   :  { %717 = vmatprep.subr.bf16.mxu1 %v914_v0 }
  0x62   :  { %718 = vmatpush3.bf16.msra.mxu1 %v767_v41 }
  0x63   :  { %719 = vmatprep.subr.bf16.mxu1 %v914_v0 }
  0x66   :  { %720 = vmatpush3.bf16.msra.mxu1 %v768_v42 }
  0x67   :  { %721 = vmatprep.subr.bf16.mxu1 %v914_v0 }
  0x6a   :  { %722 = vmatpush3.bf16.msra.mxu1 %v769_v43 }
  0x6b   :  { %723 = vmatprep.subr.bf16.mxu1 %v914_v0 }
  0x6e   :  { %724 = vmatpush3.bf16.msra.mxu1 %v770_v44 }
  0x6f   :  { %725 = vmatprep.subr.bf16.mxu1 %v914_v0 }
  0x72   :  { %726 = vmatpush3.bf16.msra.mxu1 %v771_v45 }
  0x73   :  { %727 = vmatprep.subr.bf16.mxu1 %v914_v0 }
  0x76   :  { %728 = vmatpush3.bf16.msra.mxu1 %v772_v46 }
  0xc8   :  { %v84_v14 = vpop.xlane.xlu0 %83 }
  0xc9   :  { %v85_v15 = vmax.f32 %v84_v14, 1e-24 }
  0xcb   :  { %773 = vrsqrt.f32 %v85_v15 }
  0xd0   :  { %v134_v25 = vpop.permute.xlu0 %133 }
  0xd1   :  { %vm139_vm2 = vcmp.eq.s32.totalorder %v134_v25, %v606_v23 }
  0xd2   :  { %v607_v26 = vsel %vm139_vm2, 1.0, %v914_v0 }
  0xd3   :  { %v147_v28 = vsel %vm143_vm1, %v607_v26, 0.0  ;;  %v153_v47 = vsub.f32 1.0, %v607_v26 }
  0xd4   :  { %148 = vadd.xlane.f32.xlu1 %v147_v28 }
  0xd5   :  { %v774_v16 = vpop.eup %773 }
  0xd6   :  { %v87_v17 = vmul.f32 %v774_v16, %v81_v2  ;;  %v526_v2 = vlaneseq }
  0xd8   :  { %v88_v18 = vpack.c.bf16 %v87_v17, %v87_v17  ;;  %v1083_v3 = vand.u32 127, %v526_v2 }
  0xda   :  { %668 = vmatpush3.bf16.xpose.msra.mxu0 %v88_v18  ;;  %vm528_vm3 = vcmp.lt.s32.totalorder %v1083_v3, 8 }
  0xdb   :  { %693 = vmatprep.subr.bf16.mxu0 %v914_v0 }
  0xe1   :  { %670 = vmatmul.mubr.bf16.vlgmr.msra.gmra.mrb[0].mxu0 %v88_v18 }
  0xe2   :  { %694 = vmatpush3.bf16.msra.mxu0 %v757_v19  ;;  %709 = vmatprep.mubr.msk.bf16.mxu0 %vm915_vm0, %v914_v0 }
  0xe3   :  { %695 = vmatprep.subr.bf16.mxu0 %v914_v0 }
  0xe6   :  { %696 = vmatpush3.bf16.msra.mxu0 %v758_v20 }
  0xe7   :  { %697 = vmatprep.subr.bf16.mxu0 %v914_v0 }
  0xea   :  { %698 = vmatpush3.bf16.msra.mxu0 %v759_v21 }
  0xeb   :  { %699 = vmatprep.subr.bf16.mxu0 %v914_v0 }
  0xee   :  { %700 = vmatpush3.bf16.msra.mxu0 %v760_v22 }
  0xef   :  { %701 = vmatprep.subr.bf16.mxu0 %v914_v0 }
  0xf2   :  { %702 = vmatpush3.bf16.msra.mxu0 %v761_v24 }
  0xf3   :  { %703 = vmatprep.subr.bf16.mxu0 %v914_v0 }
  0xf6   :  { %704 = vmatpush3.bf16.msra.mxu0 %v762_v27 }
  0xf7   :  { %705 = vmatprep.subr.bf16.mxu0 %v914_v0 }
  0xfa   :  { %706 = vmatpush3.bf16.msra.mxu0 %v763_v29 }
  0xfb   :  { %707 = vmatprep.subr.bf16.mxu0 %v914_v0 }
  0xfe   :  { %708 = vmatpush3.bf16.msra.mxu0 %v764_v30 }
 0x12c   :  { %v293_v32 = vpop.f32.mrb[0].mxu1 }
 0x12d   :  { %v294_v33 = vadd.f32 %v608_v31, %v293_v32  ;;  %v691_v34 = vpop.f32.mrb[1].mxu1 }
 0x12e   :  { %v296_v35 = vpop.f32.mrb[2].mxu1 }
 0x12f   :  { %775 = vtanh.f32 %v294_v33  ;;  %v692_v36 = vpop.f32.mrb[3].mxu1 }
 0x139   :  { %v776_v37 = vpop.eup %775 }
 0x13a   :  { %v300_v38 = vpack.c.bf16 %v776_v37, %v776_v37 }
 0x13c   :  { %710 = vmatmul.mubr.bf16.vlgmr.msra.gmra.mrb[4].mxu0 %v300_v38 }
 0x161   :  { %v149_v11 = vpop.xlane.xlu1 %148 }
 0x162   :  { %v150_v12 = vmax.f32 %v149_v11, 1e-06 }
 0x1b4   :  { %v123_v48 = vpop.f32.mrb[0].mxu0 }
 0x1b5   :  { %v129_v49 = vmul.f32 14.285714, %v123_v48  ;;  %v671_v50 = vpop.f32.mrb[1].mxu0 }
 0x1b6   :  { %v126_v51 = vpop.f32.mrb[2].mxu0 }
 0x1b7   :  { %v142_v52 = vmul.f32 %v607_v26, %v129_v49  ;;  %v154_v53 = vmul.f32 %v153_v47, %v129_v49  ;;  %v672_v54 = vpop.f32.mrb[3].mxu0 }
 0x1b9   :  { %v144_v55 = vsel %vm143_vm1, %v142_v52, 0.0  ;;  %v155_v56 = vsel %vm143_vm1, %v154_v53, -inf }
 0x1ba   :  { %145 = vadd.xlane.f32.xlu1 %v144_v55 }
 0x1be   :  { %156 = vmax.xlane.f32.xlu1 %v155_v56 }
 0x20f   :  { %v406_v58 = vpop.f32.mrb[4].mxu0 }
 0x210   :  { %v407_v59 = vadd.f32 %v617_v57, %v406_v58  ;;  %v711_v60 = vpop.f32.mrb[5].mxu0 }
 0x211   :  { %v409_v61 = vpop.f32.mrb[6].mxu0 }
 0x212   :  { %777 = vtanh.f32 %v407_v59  ;;  %v712_v62 = vpop.f32.mrb[7].mxu0 }
 0x213   :  { %779 = vrcp.f32 %v150_v12 }
 0x21c   :  { %v778_v63 = vpop.eup %777 }
 0x21d   :  { %v413_v1 = vpack.c.bf16 %v778_v63, %v778_v63  ;;  %v780_v15 = vpop.eup %779 }
 0x21f   :  { %730 = vmatmul.mubr.bf16.vlgmr.msra.gmra.mrb[4].mxu1 %v413_v1 }
 0x247   :  { %v146_v14 = vpop.xlane.xlu1 %145 }
 0x248   :  { %v152_v16 = vmul.f32 %v780_v15, %v146_v14 }
 0x24b   :  { %v157_v17 = vpop.xlane.xlu1 %156 }
 0x24c   :  { %v158_v18 = vmax.f32 %v152_v16, %v157_v17 }
 0x24e   :  { %v162_v19 = vsub.f32 %v154_v53, %v158_v18  ;;  %v159_v30 = vsub.f32 %v152_v16, %v158_v18 }
 0x250   :  { %v163_v20 = vmul.f32 1.442695, %v162_v19  ;;  %v160_v31 = vmul.f32 1.442695, %v159_v30 }
 0x252   :  { %781 = vpow2.f32 %v163_v20 }
 0x25c   :  { %v782_v21 = vpop.eup %781 }
 0x25d   :  { %v165_v22 = vsel %vm143_vm1, %v782_v21, 0.0 }
 0x2f2   :  { %v519_v5 = vpop.f32.mrb[4].mxu1 }
 0x2f3   :  { %v520_v6 = vadd.f32 %v626_v4, %v519_v5  ;;  %v731_v7 = vpop.f32.mrb[5].mxu1 }
 0x2f4   :  { %v522_v8 = vpop.f32.mrb[6].mxu1 }
 0x2f5   :  { %525 = vst [vmem:[#allocation8] sm:$0xff] %v520_v6  ;;  %v732_v9 = vpop.f32.mrb[7].mxu1  ;;  %v529_v10 = vsel %vm528_vm3, %v520_v6, -1e+30 }
 0x2f6   :  { %530 = vmax.xlane.f32.xlu1 %v529_v10 }
 0x307   :  { %542 = vperm.xlu1 %748, %v540_v13  }
 0x32b   :  { %166 = vadd.xlane.f32.xlu1 %v165_v22 }
 0x383   :  { %v531_v23 = vpop.xlane.xlu1 %530 }
 0x384   :  { %v532_v24 = vsub.f32 %v529_v10, %v531_v23 }
 0x386   :  { %v533_v25 = vmul.f32 1.442695, %v532_v24 }
 0x387   :  { %v543_v26 = vpop.permute.xlu1 %542 }
 0x388   :  { %783 = vpow2.f32 %v533_v25  ;;  %vm544_vm4 = vcmp.eq.s32.totalorder %v1083_v3, %v543_v26 }
 0x389   :  { %v635_v27 = vsel %vm544_vm4, 1.0, %v914_v0  ;;  %785 = vpow2.f32 %v160_v31 }
 0x38a   :  { %v547_v28 = vmul.f32 %v635_v27, %v520_v6 }
 0x38c   :  { %548 = vadd.xlane.f32.xlu1 %v547_v28 }
 0x392   :  { %v784_v29 = vpop.eup %783 }
 0x393   :  { %535 = vadd.xlane.f32.xlu0 %v784_v29  ;;  %v786_v32 = vpop.eup %785 }
 0x3b8   :  { %v167_v33 = vpop.xlane.xlu1 %166 }
 0x3b9   :  { %v168_v34 = vadd.f32 %v786_v32, %v167_v33 }
 0x3bb   :  { %787 = vlog2.f32 %v168_v34 }
 0x3c5   :  { %v788_v35 = vpop.eup %787 }
 0x3c6   :  { %v170_v36 = vmul.f32 0.6931472, %v788_v35 }
 0x3c8   :  { %v171_v37 = vadd.f32 %v170_v36, %v158_v18 }
 0x3ca   :  { %v172_v38 = vsub.f32 %v171_v37, %v152_v16 }
 0x3cc   :  { %v174_v39 = vsel %vm173_vm5, %v172_v38, 0.0 }
 0x3cd   :  { %175 = vadd.xlane.f32.xlu1 %v174_v39 }
 0x419   :  { %v549_v44 = vpop.xlane.xlu1 %548 }
 0x420   :  { %v536_v40 = vpop.xlane.xlu0 %535 }
 0x421   :  { %789 = vlog2.f32 %v536_v40 }
 0x42b   :  { %v790_v41 = vpop.eup %789 }
 0x42c   :  { %v538_v42 = vmul.f32 0.6931472, %v790_v41 }
 0x42e   :  { %v539_v43 = vadd.f32 %v538_v42, %v531_v23 }
 0x430   :  { %v550_v45 = vsub.f32 %v539_v43, %v549_v44 }
 0x432   :  { %v551_v46 = vsel %vm173_vm5, %v550_v45, 0.0 }
 0x433   :  { %552 = vadd.xlane.f32.xlu1 %v551_v46 }
 0x45a   :  { %v176_v47 = vpop.xlane.xlu1 %175 }
 0x45b   :  { %v177_v48 = vrot.slane %v176_v47, 4 }
 0x45d   :  { %v178_v49 = vadd.f32 %v177_v48, %v176_v47 }
 0x45f   :  { %v179_v50 = vrot.slane %v178_v49, 2 }
 0x461   :  { %v180_v51 = vadd.f32 %v179_v50, %v178_v49 }
 0x463   :  { %v181_v52 = vrot.slane %v180_v51, 1 }
 0x465   :  { %v182_v53 = vadd.f32 %v181_v52, %v180_v51 }
 0x467   :  { %733 = vpush %v182_v53 }
 0x468   :  { %868 = shalt.err (!%p865_p0)
}
 0x469   :  { %s869_s26 = scalar_lea.hbm %s1133_s10, 128 }
 0x46a   :  { %p870_p1 = scmp.ne.s32.totalorder %s1133_s10, %s869_s26  ;;  %p873_p2 = scmp.lt.u32.totalorder %s869_s26, %s1133_s10 }
 0x46c   :  { %p875_p3 = pnand %p873_p2, %p870_p1 }
 0x46e   :  { %878 = shalt.err (!%p875_p3)
}
 0x46f   :  { %585 = dma.vmem_to_hbm [thread:$0]  %s583_s9, 128, %s1133_s10, [#allocation4]   ;;  %vm564_vm6 = vcmp.eq.s32.totalorder %v1083_v3, 0  ;;  %vm569_vm7 = vcmp.eq.s32.totalorder %v1083_v3, 1 }
 0x470   :  { %v636_v61 = vsel %vm564_vm6, 1.0, %v914_v0  ;;  %v637_v63 = vsel %vm569_vm7, 1.0, %v914_v0  ;;  %s918_s10 = smov [#allocation9]  }
 0x471   :  { %s592_s19 = sshll.u32 %s918_s10, 4  ;;  %s593_s19 = int_to_ptr.vmem [resolvable:$true] %s592_s19 }
 0x472   :  { %s879_s0 = scalar_lea.vmem %s593_s19, 16  ;;  %s883_s8 = scalar_lea.vmem %s593_s19, 32 }
 0x473   :  { %p880_p4 = scmp.ne.s32.totalorder %s593_s19, %s879_s0  ;;  %p884_p5 = scmp.lt.s32.totalorder %s593_s19, %s593_s19 }
 0x474   :  { %p885_p6 = scmp.lt.s32.totalorder %s883_s8, %s879_s0 }
 0x476   :  { %p886_p7 = por %p885_p6, %p884_p5 }
 0x478   :  { %p887_p8 = pnand %p886_p7, %p880_p4 }
 0x498   :  { %s734_s16 = spop %733 }
 0x499   :  { %s186_s4 = smul.f32 0.125, %s734_s16 }
 0x49b   :  { %v567_v62 = vstv %s186_s4 }
 0x49c   :  { %v568_v2 = vmul.f32 %v636_v61, %v567_v62 }
 0x4c0   :  { %v553_v54 = vpop.xlane.xlu1 %552 }
 0x4c1   :  { %v554_v55 = vrot.slane %v553_v54, 4 }
 0x4c3   :  { %v555_v56 = vadd.f32 %v554_v55, %v553_v54 }
 0x4c5   :  { %v556_v57 = vrot.slane %v555_v56, 2 }
 0x4c7   :  { %v557_v58 = vadd.f32 %v556_v57, %v555_v56 }
 0x4c9   :  { %v558_v59 = vrot.slane %v557_v58, 1 }
 0x4cb   :  { %v559_v60 = vadd.f32 %v558_v59, %v557_v58 }
 0x4cd   :  { %735 = vpush %v559_v60 }
 0x4fe   :  { %s736_s20 = spop %735 }
 0x4ff   :  { %s563_s17 = smul.f32 0.125, %s736_s20 }
 0x501   :  { %v572_v1 = vstv %s563_s17 }
 0x502   :  { %v573_v4 = vmul.f32 %v637_v63, %v572_v1 }
 0x504   :  { %v574_v5 = vadd.f32 %v573_v4, %v568_v2 }
 0x506   :  { %575 = vst [vmem:[#allocation9] sm:$0x1] %v574_v5 }
 0x507   :  { %890 = shalt.err (!%p887_p8)
}
 0x508   :  { %s891_s2 = scalar_lea.hbm %s1134_s11, 16 }
 0x509   :  { %p892_p9 = scmp.ne.s32.totalorder %s1134_s11, %s891_s2  ;;  %p895_p10 = scmp.lt.u32.totalorder %s891_s2, %s1134_s11 }
 0x50b   :  { %p897_p11 = pnand %p895_p10, %p892_p9 }
 0x50d   :  { %900 = shalt.err (!%p897_p11)
}
 0x50e   :  { %595 = dma.vmem_to_hbm [thread:$0]  %s593_s19, 16, %s1134_s11, [#allocation10]  }
 0x50f   :  { %905 = dma.done.wait [#allocation4], 128  }
 0x510   :  { %906 = vsyncadd [#allocation4], 4294967168 }
 0x511   :  { %907 = dma.done.wait [#allocation10], 16  }
 0x512   :  { %908 = vsyncadd [#allocation10], 4294967280 }
 0x513   :  { %602 = vsyncpa [#allocation3], 1 }
 0x514   :  { %603 = vsyncpa [#allocation6], 1 }
 0x515   :  { %604 = vsyncpa [#allocation4], 1 }
 0x516   :  { %605 = vsyncpa [#allocation10], 1 }

</bundles_post_ra>
